<compile_context>
chip_gen: v6e
topology: v6e:2x2x1
jax: 0.10.0
libtpu: 0.0.40
codegen_flags: <defaults>
</compile_context>

<pallas_src>
import functools

import jax
import jax.numpy as jnp
from jax.experimental import pallas as pl
from jax.experimental.pallas import tpu as pltpu

NEG_SLOPE = 0.01  # nn.LeakyReLU default


def _leaky(v):
    return jnp.where(v >= 0, v, NEG_SLOPE * v)


def sc_conv_kernel(x_ref, we_ref, be_ref, w1t_ref, b1_ref, w2t_ref, b2_ref,
                   wn_ref, bn_ref, out_ref, att_ref):
    # x_ref block: (BB, rois, rois*C) -- BB batch elements per grid step.
    BB, rois, K = x_ref.shape
    C1 = we_ref.shape[1]

    # ---- EdgeConv (1 x rois kernel): one big matmul over all BB rows ----
    x2 = x_ref[...].reshape(BB * rois, K)                              # (BB*rois, rois*C)
    y = jnp.dot(x2, we_ref[...], preferred_element_type=jnp.float32) + be_ref[...]
    e = _leaky(y)                                                      # (BB*rois, C1)
    e3 = e.reshape(BB, rois, C1)

    # ---- SC_SAtt: channel mean + row-vector MLP (lane-major, batched over BB) ----
    m = jnp.mean(e3, axis=-1)                                          # (BB, rois)
    h1 = jnp.dot(m, w1t_ref[...], preferred_element_type=jnp.float32) + b1_ref[...]
    h1 = jnp.maximum(h1, 0.0)                                          # (BB, rois//4)
    h2 = jnp.dot(h1, w2t_ref[...], preferred_element_type=jnp.float32) + b2_ref[...]
    att = jax.nn.sigmoid(h2)                                           # (BB, rois)

    # ---- einsum('brqk,brqc->brkc') with q=k=1  ==  att * e  (one small relayout) ----
    op = att[:, :, None] * e3                                          # (BB, rois, C1)

    # ---- NodeConv (rois x 1 kernel): (BB, rois*C1) x (rois*C1, C2) ----
    of = op.reshape(BB, rois * C1)                                     # one relayout per block
    o = jnp.dot(of, wn_ref[...], preferred_element_type=jnp.float32) + bn_ref[...]
    o = _leaky(o)                                                      # (BB, C2)

    # Lane-dense stores (no trailing singleton dims).
    out_ref[...] = o.astype(out_ref.dtype)
    att_ref[...] = att.astype(att_ref.dtype)


@functools.partial(jax.jit, static_argnames=("rois", "C", "C1", "C2", "block_b"))
def sc_conv_forward(x, we, be, w1t, b1, w2t, b2, wn, bn, *,
                    rois, C, C1, C2, block_b=8):
    """x: (B, rois, rois, C) NHWC.  Params pre-reshaped (see make_params)."""
    B = x.shape[0]

    # Batch tile: BB elements per grid step so the EdgeConv matmul has
    # M = BB*rois (fills the MXU) and per-step overhead is amortized.
    # On v7x prefer block_b such that cdiv(B, BB) >= 2 so both TensorCores get
    # work.  VMEM budget per block = BB*rois*rois*C*4 B (double-buffered),
    # negligible at these shapes; re-derive vs. 64 MiB if rois/C grow.
    if B <= block_b:
        BB = B
    else:
        BB = max(8, (block_b // 8) * 8)   # keep BB a multiple of 8 for (8,128) tiling
    n_blocks = pl.cdiv(B, BB)
    Bp = n_blocks * BB

    x_flat = x.reshape(B, rois, rois * C)          # flatten (width, C) row-major
    if Bp != B:
        x_flat = jnp.pad(x_flat, ((0, Bp - B), (0, 0), (0, 0)))

    # TODO(synk): pre-cast x_flat / we / wn to bfloat16 (keep f32 accumulation)
    # once C/C1/C2 are large enough for HBM/MXU throughput to matter.

    grid_spec = pltpu.PrefetchScalarGridSpec(
        num_scalar_prefetch=0,
        grid=(n_blocks,),
        in_specs=[
            pl.BlockSpec((BB, rois, rois * C), lambda b: (b, 0, 0)),
            pl.BlockSpec((rois * C, C1), lambda b: (0, 0)),       # EdgeConv weight
            pl.BlockSpec((1, C1), lambda b: (0, 0)),              # EdgeConv bias
            pl.BlockSpec((rois, rois // 4), lambda b: (0, 0)),    # MLP W1^T
            pl.BlockSpec((1, rois // 4), lambda b: (0, 0)),       # MLP b1
            pl.BlockSpec((rois // 4, rois), lambda b: (0, 0)),    # MLP W2^T
            pl.BlockSpec((1, rois), lambda b: (0, 0)),            # MLP b2
            pl.BlockSpec((rois * C1, C2), lambda b: (0, 0)),      # NodeConv weight
            pl.BlockSpec((1, C2), lambda b: (0, 0)),              # NodeConv bias
        ],
        out_specs=(
            pl.BlockSpec((BB, C2), lambda b: (b, 0)),
            pl.BlockSpec((BB, rois), lambda b: (b, 0)),
        ),
    )

    out2d, att2d = pl.pallas_call(
        sc_conv_kernel,
        out_shape=(
            jax.ShapeDtypeStruct((Bp, C2), jnp.float32),
            jax.ShapeDtypeStruct((Bp, rois), jnp.float32),
        ),
        grid_spec=grid_spec,
        compiler_params=pltpu.CompilerParams(
            dimension_semantics=("parallel",)),
    )(x_flat, we, be, w1t, b1, w2t, b2, wn, bn)

    # Restore the PyTorch output shapes outside the kernel (cheap reshapes).
    out = out2d[:B].reshape(B, 1, 1, C2)
    att = att2d[:B].reshape(B, rois, 1, 1)
    return out, att


def make_params(key, rois, C, C1, C2):
    """Deterministic synthetic parameters, pre-reshaped for the kernel."""
    ks = jax.random.split(key, 8)
    # EdgeConv: torch weight (C1, C, 1, rois) -> stored as (C1, C, rois); bias (C1,)
    w_edge = jax.random.normal(ks[0], (C1, C, rois), jnp.float32) * 0.1
    b_edge = jax.random.normal(ks[1], (C1,), jnp.float32) * 0.1
    # MLP: Linear(rois, rois//4), Linear(rois//4, rois)  (torch weight layout)
    w1 = jax.random.normal(ks[2], (rois // 4, rois), jnp.float32) * 0.1
    b1 = jax.random.normal(ks[3], (rois // 4,), jnp.float32) * 0.1
    w2 = jax.random.normal(ks[4], (rois, rois // 4), jnp.float32) * 0.1
    b2 = jax.random.normal(ks[5], (rois,), jnp.float32) * 0.1
    # NodeConv: torch weight (C2, C1, rois, 1) -> stored as (C2, C1, rois); bias (C2,)
    w_node = jax.random.normal(ks[6], (C2, C1, rois), jnp.float32) * 0.1
    b_node = jax.random.normal(ks[7], (C2,), jnp.float32) * 0.1

    # Kernel-friendly shapes:
    # y[r,o] = sum_{w,c} x[r, w*C+c] * we[w*C+c, o]   with  we[w*C+c, o] = W_e[o, c, w]
    we = jnp.transpose(w_edge, (2, 1, 0)).reshape(rois * C, C1)     # (w, c, o)
    be = b_edge.reshape(1, C1)
    # Row-vector MLP: h1 = m @ W1^T + b1 ; h2 = h1 @ W2^T + b2
    w1t = w1.T                                                      # (rois, rois//4)
    b1r = b1.reshape(1, rois // 4)
    w2t = w2.T                                                      # (rois//4, rois)
    b2r = b2.reshape(1, rois)
    # o[c2] = sum_{r,c1} op[r*C1+c1] * wn[r*C1+c1, c2]  with wn[r*C1+c1, c2] = W_n[c2, c1, r]
    wn = jnp.transpose(w_node, (2, 1, 0)).reshape(rois * C1, C2)    # (r, c1, c2)
    bn = b_node.reshape(1, C2)
    return we, be, w1t, b1r, w2t, b2r, wn, bn


def reference(x, params, rois, C, C1, C2):
    """Pure-JAX reference matching the PyTorch module semantics."""
    we, be, w1t, b1r, w2t, b2r, wn, bn = params
    B = x.shape[0]
    x2 = x.reshape(B, rois, rois * C)
    y = jnp.einsum('brk,ko->bro', x2, we) + be
    e = jnp.where(y >= 0, y, NEG_SLOPE * y)
    m = jnp.mean(e, axis=2)                                          # (B, rois)
    h1 = jnp.maximum(m @ w1t + b1r, 0.0)
    h2 = h1 @ w2t + b2r
    att = jax.nn.sigmoid(h2)                                         # (B, rois)
    op = att[..., None] * e
    o = op.reshape(B, rois * C1) @ wn + bn
    o = jnp.where(o >= 0, o, NEG_SLOPE * o)
    return o.reshape(B, 1, 1, C2), att.reshape(B, rois, 1, 1)


if __name__ == "__main__":
    B, rois, C, C1, C2 = 2, 16, 4, 8, 16

    key = jax.random.PRNGKey(0)
    kx, kp = jax.random.split(key)
    x = jax.random.normal(kx, (B, rois, rois, C), jnp.float32)
    params = make_params(kp, rois, C, C1, C2)

    out, att = sc_conv_forward(x, *params, rois=rois, C=C, C1=C1, C2=C2)
    jax.block_until_ready((out, att))

    out_ref, att_ref = reference(x, params, rois, C, C1, C2)
    assert out.shape == (B, 1, 1, C2) and att.shape == (B, rois, 1, 1)
    assert jnp.allclose(out, out_ref, atol=1e-5, rtol=1e-5)
    assert jnp.allclose(att, att_ref, atol=1e-5, rtol=1e-5)

    print("KERNEL_OK")
</pallas_src>

<mosaic_0001>
module attributes {stable_mosaic.version = 11 : i64} {
  func.func @sc_conv_kernel(%arg0: i32, %arg1: memref<2x16x64xf32, #tpu.memory_space<vmem>>, %arg2: memref<64x8xf32, #tpu.memory_space<vmem>>, %arg3: memref<1x8xf32, #tpu.memory_space<vmem>>, %arg4: memref<16x4xf32, #tpu.memory_space<vmem>>, %arg5: memref<1x4xf32, #tpu.memory_space<vmem>>, %arg6: memref<4x16xf32, #tpu.memory_space<vmem>>, %arg7: memref<1x16xf32, #tpu.memory_space<vmem>>, %arg8: memref<128x16xf32, #tpu.memory_space<vmem>>, %arg9: memref<1x16xf32, #tpu.memory_space<vmem>>, %arg10: memref<2x16xf32, #tpu.memory_space<vmem>>, %arg11: memref<2x16xf32, #tpu.memory_space<vmem>>) attributes {dimension_semantics = [#tpu.dimension_semantics<parallel>], iteration_bounds = array<i64: 1>, scalar_prefetch = 0 : i64, scratch_operands = 0 : i64, tpu.core_type = #tpu.core_type<tc>, window_params = [{transform_indices = @transform_0, window_bounds = array<i64: 2, 16, 64>}, {pipeline_mode = #tpu.pipeline_mode<synchronous>, transform_indices = @transform_1, window_bounds = array<i64: 64, 8>}, {pipeline_mode = #tpu.pipeline_mode<synchronous>, transform_indices = @transform_2, window_bounds = array<i64: 1, 8>}, {pipeline_mode = #tpu.pipeline_mode<synchronous>, transform_indices = @transform_3, window_bounds = array<i64: 16, 4>}, {pipeline_mode = #tpu.pipeline_mode<synchronous>, transform_indices = @transform_4, window_bounds = array<i64: 1, 4>}, {pipeline_mode = #tpu.pipeline_mode<synchronous>, transform_indices = @transform_5, window_bounds = array<i64: 4, 16>}, {pipeline_mode = #tpu.pipeline_mode<synchronous>, transform_indices = @transform_6, window_bounds = array<i64: 1, 16>}, {pipeline_mode = #tpu.pipeline_mode<synchronous>, transform_indices = @transform_7, window_bounds = array<i64: 128, 16>}, {pipeline_mode = #tpu.pipeline_mode<synchronous>, transform_indices = @transform_8, window_bounds = array<i64: 1, 16>}, {transform_indices = @transform_9, window_bounds = array<i64: 2, 16>}, {transform_indices = @transform_10, window_bounds = array<i64: 2, 16>}]} {
    %c0 = arith.constant 0 : index
    %c0_0 = arith.constant 0 : index
    %c0_1 = arith.constant 0 : index
    %0 = vector.load %arg1[%c0, %c0_0, %c0_1] : memref<2x16x64xf32, #tpu.memory_space<vmem>>, vector<2x16x64xf32>
    %1 = vector.shape_cast %0 : vector<2x16x64xf32> to vector<32x64xf32>
    %c0_2 = arith.constant 0 : index
    %c0_3 = arith.constant 0 : index
    %2 = vector.load %arg2[%c0_2, %c0_3] : memref<64x8xf32, #tpu.memory_space<vmem>>, vector<64x8xf32>
    %cst = arith.constant dense<0.000000e+00> : vector<32x8xf32>
    %3 = tpu.matmul %1, %2, %cst {dimension_numbers = #tpu.dot_dimension_numbers<[1], [0], [0], [1], [0, 0, 1, 1], [], []>} : vector<32x64xf32>, vector<64x8xf32>, vector<32x8xf32> -> vector<32x8xf32>
    %c0_4 = arith.constant 0 : index
    %c0_5 = arith.constant 0 : index
    %4 = vector.load %arg3[%c0_4, %c0_5] : memref<1x8xf32, #tpu.memory_space<vmem>>, vector<1x8xf32>
    %5 = vector.broadcast %4 : vector<1x8xf32> to vector<32x8xf32>
    %6 = arith.addf %3, %5 : vector<32x8xf32>
    %cst_6 = arith.constant 0.000000e+00 : f32
    %7 = vector.broadcast %cst_6 : f32 to vector<32x8xf32>
    %8 = arith.cmpf oge, %6, %7 : vector<32x8xf32>
    %cst_7 = arith.constant 0.00999999977 : f32
    %9 = vector.broadcast %cst_7 : f32 to vector<32x8xf32>
    %10 = arith.mulf %9, %6 : vector<32x8xf32>
    %11 = arith.select %8, %6, %10 : vector<32x8xi1>, vector<32x8xf32>
    %12 = vector.shape_cast %11 : vector<32x8xf32> to vector<2x16x8xf32>
    %cst_8 = arith.constant dense<0.000000e+00> : vector<2x16xf32>
    %13 = vector.multi_reduction <add>, %12, %cst_8 [2] : vector<2x16x8xf32> to vector<2x16xf32>
    %cst_9 = arith.constant 8.000000e+00 : f32
    %14 = vector.broadcast %cst_9 : f32 to vector<2x16xf32>
    %15 = arith.divf %13, %14 : vector<2x16xf32>
    %c0_10 = arith.constant 0 : index
    %c0_11 = arith.constant 0 : index
    %16 = vector.load %arg4[%c0_10, %c0_11] : memref<16x4xf32, #tpu.memory_space<vmem>>, vector<16x4xf32>
    %cst_12 = arith.constant dense<0.000000e+00> : vector<2x4xf32>
    %17 = tpu.matmul %15, %16, %cst_12 {dimension_numbers = #tpu.dot_dimension_numbers<[1], [0], [0], [1], [0, 0, 1, 1], [], []>} : vector<2x16xf32>, vector<16x4xf32>, vector<2x4xf32> -> vector<2x4xf32>
    %c0_13 = arith.constant 0 : index
    %c0_14 = arith.constant 0 : index
    %18 = vector.load %arg5[%c0_13, %c0_14] : memref<1x4xf32, #tpu.memory_space<vmem>>, vector<1x4xf32>
    %19 = vector.broadcast %18 : vector<1x4xf32> to vector<2x4xf32>
    %20 = arith.addf %17, %19 : vector<2x4xf32>
    %cst_15 = arith.constant 0.000000e+00 : f32
    %21 = vector.broadcast %cst_15 : f32 to vector<2x4xf32>
    %22 = arith.maximumf %20, %21 : vector<2x4xf32>
    %c0_16 = arith.constant 0 : index
    %c0_17 = arith.constant 0 : index
    %23 = vector.load %arg6[%c0_16, %c0_17] : memref<4x16xf32, #tpu.memory_space<vmem>>, vector<4x16xf32>
    %cst_18 = arith.constant dense<0.000000e+00> : vector<2x16xf32>
    %24 = tpu.matmul %22, %23, %cst_18 {dimension_numbers = #tpu.dot_dimension_numbers<[1], [0], [0], [1], [0, 0, 1, 1], [], []>} : vector<2x4xf32>, vector<4x16xf32>, vector<2x16xf32> -> vector<2x16xf32>
    %c0_19 = arith.constant 0 : index
    %c0_20 = arith.constant 0 : index
    %25 = vector.load %arg7[%c0_19, %c0_20] : memref<1x16xf32, #tpu.memory_space<vmem>>, vector<1x16xf32>
    %26 = vector.broadcast %25 : vector<1x16xf32> to vector<2x16xf32>
    %27 = arith.addf %24, %26 : vector<2x16xf32>
    %28 = arith.negf %27 : vector<2x16xf32>
    %29 = math.exp %28 : vector<2x16xf32>
    %cst_21 = arith.constant 1.000000e+00 : f32
    %30 = vector.broadcast %cst_21 : f32 to vector<2x16xf32>
    %31 = arith.addf %30, %29 : vector<2x16xf32>
    %32 = arith.divf %30, %31 : vector<2x16xf32>
    %33 = vector.shape_cast %32 : vector<2x16xf32> to vector<2x16x1xf32>
    %34 = vector.broadcast %33 : vector<2x16x1xf32> to vector<2x16x8xf32>
    %35 = arith.mulf %34, %12 : vector<2x16x8xf32>
    %36 = vector.shape_cast %35 : vector<2x16x8xf32> to vector<2x128xf32>
    %c0_22 = arith.constant 0 : index
    %c0_23 = arith.constant 0 : index
    %37 = vector.load %arg8[%c0_22, %c0_23] : memref<128x16xf32, #tpu.memory_space<vmem>>, vector<128x16xf32>
    %cst_24 = arith.constant dense<0.000000e+00> : vector<2x16xf32>
    %38 = tpu.matmul %36, %37, %cst_24 {dimension_numbers = #tpu.dot_dimension_numbers<[1], [0], [0], [1], [0, 0, 1, 1], [], []>} : vector<2x128xf32>, vector<128x16xf32>, vector<2x16xf32> -> vector<2x16xf32>
    %c0_25 = arith.constant 0 : index
    %c0_26 = arith.constant 0 : index
    %39 = vector.load %arg9[%c0_25, %c0_26] : memref<1x16xf32, #tpu.memory_space<vmem>>, vector<1x16xf32>
    %40 = vector.broadcast %39 : vector<1x16xf32> to vector<2x16xf32>
    %41 = arith.addf %38, %40 : vector<2x16xf32>
    %cst_27 = arith.constant 0.000000e+00 : f32
    %42 = vector.broadcast %cst_27 : f32 to vector<2x16xf32>
    %43 = arith.cmpf oge, %41, %42 : vector<2x16xf32>
    %cst_28 = arith.constant 0.00999999977 : f32
    %44 = vector.broadcast %cst_28 : f32 to vector<2x16xf32>
    %45 = arith.mulf %44, %41 : vector<2x16xf32>
    %46 = arith.select %43, %41, %45 : vector<2x16xi1>, vector<2x16xf32>
    %c0_29 = arith.constant 0 : index
    %c0_30 = arith.constant 0 : index
    %47 = vector.load %arg10[%c0_29, %c0_30] : memref<2x16xf32, #tpu.memory_space<vmem>>, vector<2x16xf32>
    tpu.vector_store %arg10[%c0_29, %c0_30], %46 {strides = array<i32>} : memref<2x16xf32, #tpu.memory_space<vmem>>, vector<2x16xf32>,
    %c0_31 = arith.constant 0 : index
    %c0_32 = arith.constant 0 : index
    %48 = vector.load %arg11[%c0_31, %c0_32] : memref<2x16xf32, #tpu.memory_space<vmem>>, vector<2x16xf32>
    tpu.vector_store %arg11[%c0_31, %c0_32], %32 {strides = array<i32>} : memref<2x16xf32, #tpu.memory_space<vmem>>, vector<2x16xf32>,
    return
  }
  func.func @transform_0(%arg0: i32) -> (i32, i32, i32) {
    %c0_i32 = arith.constant 0 : i32
    %c0_i32_0 = arith.constant 0 : i32
    %c0_i32_1 = arith.constant 0 : i32
    return %arg0, %c0_i32, %c0_i32_0 : i32, i32, i32
  }
  func.func @transform_1(%arg0: i32) -> (i32, i32) {
    %c0_i32 = arith.constant 0 : i32
    %c0_i32_0 = arith.constant 0 : i32
    %c0_i32_1 = arith.constant 0 : i32
    return %c0_i32, %c0_i32_0 : i32, i32
  }
  func.func @transform_2(%arg0: i32) -> (i32, i32) {
    %c0_i32 = arith.constant 0 : i32
    %c0_i32_0 = arith.constant 0 : i32
    %c0_i32_1 = arith.constant 0 : i32
    return %c0_i32, %c0_i32_0 : i32, i32
  }
  func.func @transform_3(%arg0: i32) -> (i32, i32) {
    %c0_i32 = arith.constant 0 : i32
    %c0_i32_0 = arith.constant 0 : i32
    %c0_i32_1 = arith.constant 0 : i32
    return %c0_i32, %c0_i32_0 : i32, i32
  }
  func.func @transform_4(%arg0: i32) -> (i32, i32) {
    %c0_i32 = arith.constant 0 : i32
    %c0_i32_0 = arith.constant 0 : i32
    %c0_i32_1 = arith.constant 0 : i32
    return %c0_i32, %c0_i32_0 : i32, i32
  }
  func.func @transform_5(%arg0: i32) -> (i32, i32) {
    %c0_i32 = arith.constant 0 : i32
    %c0_i32_0 = arith.constant 0 : i32
    %c0_i32_1 = arith.constant 0 : i32
    return %c0_i32, %c0_i32_0 : i32, i32
  }
  func.func @transform_6(%arg0: i32) -> (i32, i32) {
    %c0_i32 = arith.constant 0 : i32
    %c0_i32_0 = arith.constant 0 : i32
    %c0_i32_1 = arith.constant 0 : i32
    return %c0_i32, %c0_i32_0 : i32, i32
  }
  func.func @transform_7(%arg0: i32) -> (i32, i32) {
    %c0_i32 = arith.constant 0 : i32
    %c0_i32_0 = arith.constant 0 : i32
    %c0_i32_1 = arith.constant 0 : i32
    return %c0_i32, %c0_i32_0 : i32, i32
  }
  func.func @transform_8(%arg0: i32) -> (i32, i32) {
    %c0_i32 = arith.constant 0 : i32
    %c0_i32_0 = arith.constant 0 : i32
    %c0_i32_1 = arith.constant 0 : i32
    return %c0_i32, %c0_i32_0 : i32, i32
  }
  func.func @transform_9(%arg0: i32) -> (i32, i32) {
    %c0_i32 = arith.constant 0 : i32
    %c0_i32_0 = arith.constant 0 : i32
    return %arg0, %c0_i32 : i32, i32
  }
  func.func @transform_10(%arg0: i32) -> (i32, i32) {
    %c0_i32 = arith.constant 0 : i32
    %c0_i32_0 = arith.constant 0 : i32
    return %arg0, %c0_i32 : i32, i32
  }
}

</mosaic_0001>

<bundles_post_ra>
// kernel: sc_conv_forward.1
= control target key start
LH: loop header
LB: loop body
LE: loop exit
PB: predicated region body
PF: predicated region fallthrough
CT: control target
= control target key end

     0   :  { %16 = vsyncpa [#allocation3], 0  ;;  %vm55_vm0 = vcmask 523264   ;;  %s1228_s0 = inlined_call_operand.vmem [shape: f32[2,16,64], index: 0, kind: input, shape index: {}]   ;;  %s1229_s1 = inlined_call_operand.vmem [shape: f32[64,8], index: 1, kind: input, shape index: {}]   ;;  %s1230_s2 = inlined_call_operand.vmem [shape: f32[1,8], index: 2, kind: input, shape index: {}]   ;;  %s1231_s3 = inlined_call_operand.vmem [shape: f32[16,4], index: 3, kind: input, shape index: {}]   ;;  %s1232_s4 = inlined_call_operand.vmem [shape: f32[1,4], index: 4, kind: input, shape index: {}]   ;;  %s1233_s5 = inlined_call_operand.vmem [shape: f32[4,16], index: 5, kind: input, shape index: {}]   ;;  %s1234_s6 = inlined_call_operand.vmem [shape: f32[1,16], index: 6, kind: input, shape index: {}]   ;;  %s1235_s7 = inlined_call_operand.vmem [shape: f32[128,16], index: 7, kind: input, shape index: {}]   ;;  %s1236_s8 = inlined_call_operand.vmem [shape: f32[1,16], index: 8, kind: input, shape index: {}]   ;;  %s1237_s9 = inlined_call_operand.hbm [shape: f32[2,16], index: 9, kind: output, shape index: {0}]   ;;  %s1238_s10 = inlined_call_operand.hbm [shape: f32[2,16], index: 10, kind: output, shape index: {1}]  }
   0x1   :  { %v47_v0 = vld [vmem:[%s1229_s1 + $0x38] sm:$0xff]  ;;  %v46_v1 = vld [vmem:[%s1229_s1 + $0x30] sm:$0xff]  ;;  %v45_v2 = vld [vmem:[%s1229_s1 + $0x28] sm:$0xff] }
   0x2   :  { %804 = vmatprep.subr.mxu0 %v47_v0  ;;  %v36_v3 = vld [vmem:[%s1228_s0] sm:$0xff] }
   0x3   :  { %805 = vmatpush3.msra.mxu0 %v47_v0  ;;  %820 = vmatprep.mubr.msk.f32.mxu0 %vm55_vm0, %v36_v3  ;;  %v44_v4 = vld [vmem:[%s1229_s1 + $0x20] sm:$0xff] }
   0x4   :  { %806 = vmatprep.subr.mxu0 %v46_v1 }
   0x5   :  { %807 = vmatpush3.msra.mxu0 %v46_v1 }
   0x6   :  { %17 = vsyncpa [#allocation5], 0  ;;  %808 = vmatprep.subr.mxu0 %v45_v2  ;;  %v43_v5 = vld [vmem:[%s1229_s1 + $0x18] sm:$0xff]  ;;  %v42_v6 = vld [vmem:[%s1229_s1 + $0x10] sm:$0xff]  ;;  %vm165_vm3 = vcmask 64512   ;;  %v942_v34 = vmov 0.0   ;;  %v196_v36 = vlaneseq }
   0x7   :  { %809 = vmatpush3.msra.mxu0 %v45_v2  ;;  %v41_v7 = vld [vmem:[%s1229_s1 + $0x8] sm:$0xff]  ;;  %v40_v8 = vld [vmem:[%s1229_s1] sm:$0xff]  ;;  %v38_v10 = vld [vmem:[%s1228_s0 + $0x10] sm:$0xff]  ;;  %838 = vmatprep.subr.mxu1 %v942_v34  ;;  %vm943_vm6 = vmmov 0   ;;  %vm207_vm7 = vcmask 130112   ;;  %vm218_vm8 = vcmask 1041409  }
   0x8   :  { %810 = vmatprep.subr.mxu0 %v44_v4  ;;  %v37_v9 = vld [vmem:[%s1228_s0 + $0x8] sm:$0xff]  ;;  %v39_v11 = vld [vmem:[%s1228_s0 + $0x18] sm:$0xff]  ;;  %v758_v12 = vld [vmem:[%s1230_s2] ss:$0 sm:$0xff]  ;;  %870 = vmatprep.mubr.msk.f32.mxu1 %vm943_vm6, %v942_v34  ;;  %v197_v37 = vand.u32 127, %v196_v36  ;;  %v1091_v40 = vshrl.u32 %v196_v36, 7 }
   0x9   :  { %811 = vmatpush3.msra.mxu0 %v44_v4  ;;  %v184_v33 = vld [vmem:[%s1231_s3 + $0x8] sm:$0xff]  ;;  %v183_v35 = vld [vmem:[%s1231_s3] sm:$0xff]  ;;  %vm220_vm9 = vcmask 130048   ;;  %vm306_vm10 = vcmask 1043456   ;;  %vm302_vm11 = vcmask 31744   ;;  %vm727_vm12 = vcmask 123904  }
   0xa   :  { %812 = vmatprep.subr.mxu0 %v43_v5  ;;  %v202_v39 = vadd.s32 4294967288, %v197_v37  ;;  %v200_v45 = vsub.s32 %v197_v37, %v1091_v40  ;;  %v294_v57 = vld [vmem:[%s1233_s5] sm:$0xf]  ;;  %v641_v36 = vld [vmem:[%s1235_s7 + $0x50] sm:$0xff]  ;;  %s946_s16 = smov 16   ;;  %s947_s0 = smov 8  }
   0xb   :  { %813 = vmatpush3.msra.mxu0 %v43_v5  ;;  %v763_v58 = vld [vmem:[%s1232_s4] ss:$0 sm:$0xff]  ;;  %s948_s19 = smov 24   ;;  %s949_s21 = smov 64   ;;  %vm606_vm13 = vcmask 195584   ;;  %vm608_vm14 = vcmask 261120  }
   0xc   :  { %814 = vmatprep.subr.mxu0 %v42_v6  ;;  %v205_v43 = vsub.s32 %v202_v39, %v1091_v40  ;;  %v765_v63 = vld [vmem:[%s1234_s6] ss:$0 sm:$0xff]  ;;  %s950_s24 = smov 72   ;;  %s951_s6 = smov 80   ;;  %vm610_vm15 = vcmask 326656  }
   0xd   :  { %815 = vmatpush3.msra.mxu0 %v42_v6  ;;  %v399_v6 = vsub.s32 1, %v1091_v40  ;;  %s952_s27 = smov 88   ;;  %s953_s30 = smov 32  }
   0xe   :  { %816 = vmatprep.subr.mxu0 %v41_v7  ;;  %s954_s13 = smov 40   ;;  %s956_s1 = smov 56  }
   0xf   :  { %817 = vmatpush3.msra.mxu0 %v41_v7  ;;  %v388_v7 = vsub.s32 0, %v1091_v40  ;;  %s957_s17 = smov 96   ;;  %s960_s2 = smov 120  }
  0x10   :  { %818 = vmatprep.subr.mxu0 %v40_v8  ;;  %s961_s18 = smov [#allocation4]  }
  0x11   :  { %819 = vmatpush3.msra.mxu0 %v40_v8 }
  0x12   :  { %821 = vmatmul.mubr.msk.f32.vlgmr.msra.gmra.mxu0 %vm55_vm0, %v37_v9  ;;  %826 = vmatprep.subr.mxu0 %v942_v34 }
  0x13   :  { %823 = vmatprep.mubr.msk.f32.mxu0 %vm55_vm0, %v38_v10  ;;  %827 = vmatpush3.msra.mxu0 %v184_v33 }
  0x14   :  { %828 = vmatprep.subr.mxu0 %v942_v34 }
  0x15   :  { %829 = vmatpush3.msra.mxu0 %v183_v35 }
  0x16   :  { %824 = vmatmul.mubr.msk.f32.gmra.mxu0 %vm55_vm0, %v39_v11  ;;  %833 = vmatprep.subr.mxu0 %v942_v34  ;;  %v944_v11 = vmov 1983009808  }
  0x17   :  { %830 = vmatprep.mubr.msk.f32.mxu0 %vm943_vm6, %v942_v34 }
  0xd2   :  { %v822_v13 = vpop.f32.mrf.mxu0 }
  0xd3   :  { %v140_v14 = vadd.f32 %v822_v13, %v758_v12 }
  0xd4   :  { %v134_v15 = vpop.f32.mrf.mxu0 }
  0xd5   :  { %v135_v16 = vadd.f32 %v758_v12, %v134_v15  ;;  %v158_v18 = vmul.f32 0.01, %v140_v14  ;;  %vm154_vm2 = vcmp.ge.f32.partialorder %v140_v14, 0.0 }
  0xd6   :  { %v825_v17 = vpop.f32.mrf.mxu0 }
  0xd7   :  { %v157_v19 = vmul.f32 0.01, %v135_v16  ;;  %v150_v20 = vadd.f32 %v825_v17, %v758_v12  ;;  %vm153_vm1 = vcmp.ge.f32.partialorder %v135_v16, 0.0  ;;  %v1065_v27 = vsel %vm154_vm2, %v140_v14, %v158_v18  ;;  %v645_v17 = vld [vmem:[%s1235_s7 + $0x70] sm:$0xff]  ;;  %v644_v18 = vld [vmem:[%s1235_s7 + $0x68] sm:$0xff] }
  0xd8   :  { %v144_v21 = vpop.f32.mrf.mxu0  ;;  %v169_v30 = vsel %vm165_vm3, %v1065_v27, 0.0  ;;  %v945_v14 = vmov 1934713408   ;;  %vm614_vm2 = vcmask 457728  }
  0xd9   :  { %v145_v22 = vadd.f32 %v758_v12, %v144_v21  ;;  %v1061_v23 = vsel %vm153_vm1, %v135_v16, %v157_v19  ;;  %v160_v25 = vmul.f32 0.01, %v150_v20  ;;  %vm156_vm5 = vcmp.ge.f32.partialorder %v150_v20, 0.0  ;;  %v646_v16 = vld [vmem:[%s1235_s7 + $0x78] sm:$0xff] }
  0xda   :  { %v166_v24 = vsel %vm165_vm3, %v1061_v23, 0.0  ;;  %v414_v12 = vunpack.c.l.s4 %v944_v11  ;;  %v445_v15 = vunpack.c.l.s4 %v945_v14  ;;  %839 = vmatpush3.msra.mxu1 %v646_v16  ;;  %vm612_vm1 = vcmask 392192  }
  0xdb   :  { %v159_v26 = vmul.f32 0.01, %v145_v22  ;;  %167 = vadd.xlane.f32.xlu0 %v166_v24  ;;  %vm155_vm4 = vcmp.ge.f32.partialorder %v145_v22, 0.0  ;;  %v1073_v31 = vsel %vm156_vm5, %v150_v20, %v160_v25  ;;  %840 = vmatprep.subr.mxu1 %v942_v34  ;;  %vm621_vm5 = vcmask 719872  }
  0xdc   :  { %v175_v32 = vsel %vm165_vm3, %v1073_v31, 0.0  ;;  %v415_v13 = vunpack.c.0.s8 %v414_v12  ;;  %v446_v20 = vunpack.c.0.s8 %v445_v15  ;;  %841 = vmatpush3.msra.mxu1 %v645_v17 }
  0xdd   :  { %v1067_v28 = vsel %vm155_vm4, %v145_v22, %v159_v26  ;;  %842 = vmatprep.subr.mxu1 %v942_v34  ;;  %v643_v26 = vld [vmem:[%s1235_s7 + $0x60] sm:$0xff]  ;;  %vm617_vm4 = vcmask 588800  }
  0xde   :  { %v172_v29 = vsel %vm165_vm3, %v1067_v28, 0.0  ;;  %v1121_v19 = vsub.s32 %v415_v13, %v1091_v40  ;;  %843 = vmatpush3.msra.mxu1 %v644_v18 }
  0xdf   :  { %173 = vadd.xlane.f32.xlu1 %v172_v29  ;;  %170 = vadd.xlane.f32.xlu0 %v169_v30  ;;  %v1131_v29 = vsub.s32 %v446_v20, %v1091_v40  ;;  %v640_v40 = vld [vmem:[%s1235_s7 + $0x48] sm:$0xff] }
  0xe0   :  { %844 = vmatprep.subr.mxu1 %v942_v34 }
  0xe1   :  { %845 = vmatpush3.msra.mxu1 %v643_v26 }
  0xe2   :  { %846 = vmatprep.subr.mxu1 %v942_v34 }
  0xe3   :  { %176 = vadd.xlane.f32.xlu1 %v175_v32 }
 0x164   :  { %v168_v38 = vpop.xlane.xlu0 %167 }
 0x165   :  { %v179_v46 = vmul.f32 0.125, %v168_v38 }
 0x167   :  { %v201_v51 = vrot.slane %v179_v46, %v200_v45 }
 0x168   :  { %v174_v41 = vpop.xlane.xlu1 %173  ;;  %v171_v42 = vpop.xlane.xlu0 %170 }
 0x169   :  { %v180_v44 = vmul.f32 0.125, %v171_v42  ;;  %v181_v47 = vmul.f32 0.125, %v174_v41 }
 0x16b   :  { %v206_v49 = vrot.slane %v180_v44, %v205_v43  ;;  %v212_v52 = vrot.slane %v181_v47, %v200_v45  ;;  %v639_v45 = vld [vmem:[%s1235_s7 + $0x40] sm:$0xff] }
 0x16c   :  { %v177_v48 = vpop.xlane.xlu1 %176 }
 0x16d   :  { %v182_v50 = vmul.f32 0.125, %v177_v48  ;;  %v208_v54 = vsel %vm207_vm7, %v206_v49, %v201_v51  ;;  %v638_v48 = vld [vmem:[%s1235_s7 + $0x38] sm:$0xff] }
 0x16f   :  { %v216_v53 = vrot.slane %v182_v50, %v205_v43 }
 0x171   :  { %v217_v55 = vsel %vm207_vm7, %v216_v53, %v212_v52  ;;  %vm625_vm7 = vcmask 850944  }
 0x172   :  { %v219_v56 = vsel %vm218_vm8, %v217_v55, %v208_v54  ;;  %v637_v54 = vld [vmem:[%s1235_s7 + $0x30] sm:$0xff]  ;;  %vm627_vm8 = vcmask 916480  }
 0x173   :  { %831 = vmatmul.mubr.msk.f32.vlgmr.msra.gmra.mxu0 %vm220_vm9, %v219_v56 }
 0x174   :  { %835 = vmatprep.mubr.msk.f32.mxu0 %vm943_vm6, %v942_v34  ;;  %834 = vmatpush3.msk.msra.mxu0 %vm306_vm10, %v294_v57  ;;  %vm623_vm6 = vcmask 785408  }
 0x233   :  { %v289_v59 = vpop.f32.mrf.mxu0 }
 0x234   :  { %v290_v60 = vadd.f32 %v763_v58, %v289_v59  ;;  %v636_v59 = vld [vmem:[%s1235_s7 + $0x28] sm:$0xff] }
 0x235   :  { %v832_v61 = vpop.f32.mrf.mxu0 }
 0x236   :  { %v293_v62 = vmax.f32 %v290_v60, 0.0  ;;  %v635_v61 = vld [vmem:[%s1235_s7 + $0x20] sm:$0xff] }
 0x238   :  { %836 = vmatmul.mubr.msk.f32.vlgmr.msra.gmra.mxu0 %vm302_vm11, %v293_v62 }
 0x2f8   :  { %v376_v0 = vpop.f32.mrf.mxu0 }
 0x2f9   :  { %v377_v1 = vadd.f32 %v765_v63, %v376_v0 }
 0x2fa   :  { %v837_v2 = vpop.f32.mrf.mxu0 }
 0x2fb   :  { %v768_v3 = vmul.f32 -1.442695, %v377_v1  ;;  %v634_v2 = vld [vmem:[%s1235_s7 + $0x18] sm:$0xff] }
 0x2fd   :  { %894 = vpow2.f32 %v768_v3 }
 0x30a   :  { %v895_v4 = vpop.eup %894 }
 0x30b   :  { %v383_v5 = vadd.f32 1.0, %v895_v4  ;;  %v633_v4 = vld [vmem:[%s1235_s7 + $0x10] sm:$0xff] }
 0x30d   :  { %896 = vrcp.f32 %v383_v5 }
 0x31a   :  { %v897_v8 = vpop.eup %896 }
 0x31b   :  { %v400_v9 = vrot.slane %v897_v8, %v399_v6  ;;  %v389_v10 = vrot.slane %v897_v8, %v388_v7  ;;  %729 = vst.msk [vmem:[#allocation4] sm:$0x3] %vm727_vm12, %v897_v8  ;;  %v632_v8 = vld [vmem:[%s1235_s7 + $0x8] sm:$0xff] }
 0x31d   :  { %402 = vbcast.lane.b32.xlu1 %v400_v9, 256  ;;  %391 = vbcast.lane.b32.xlu0 %v389_v10, 256 }
 0x321   :  { %395 = vbcast.lane.b32.xlu1 %v389_v10, 264 }
 0x325   :  { %406 = vbcast.lane.b32.xlu1 %v400_v9, 264  ;;  %v631_v9 = vld [vmem:[%s1235_s7] sm:$0xff] }
 0x38f   :  { %v403_v21 = vpop.permute.xlu1 %402  ;;  %v392_v22 = vpop.permute.xlu0 %391 }
 0x390   :  { %v410_v24 = vmul.f32 %v403_v21, %v1067_v28  ;;  %v408_v25 = vmul.f32 %v392_v22, %v1061_v23  ;;  %v642_v28 = vld [vmem:[%s1235_s7 + $0x58] sm:$0xff]  ;;  %s958_s7 = smov 104  }
 0x391   :  { %847 = vmatpush3.msra.mxu1 %v642_v28 }
 0x392   :  { %v434_v30 = vrot.slane %v410_v24, %v1121_v19  ;;  %v419_v32 = vrot.slane %v408_v25, %v1121_v19  ;;  %848 = vmatprep.subr.mxu1 %v942_v34  ;;  %v427_v41 = vcombine.high %v410_v24, %v942_v34  ;;  %v412_v43 = vcombine.high %v408_v25, %v942_v34 }
 0x393   :  { %v396_v23 = vpop.permute.xlu1 %395  ;;  %849 = vmatpush3.msra.mxu1 %v641_v36 }
 0x394   :  { %v442_v33 = vcombine.low %v419_v32, %v434_v30  ;;  %v443_v35 = vcombine.high %v419_v32, %v434_v30  ;;  %v409_v37 = vmul.f32 %v396_v23, %v1065_v27  ;;  %850 = vmatprep.subr.mxu1 %v942_v34  ;;  %v426_v49 = vrot.slane %v412_v43, %v1121_v19 }
 0x395   :  { %851 = vmatpush3.msra.mxu1 %v640_v40 }
 0x396   :  { %v457_v38 = vrot.slane %v443_v35, %v1131_v29  ;;  %v1146_v39 = vrot.slane %v442_v33, %v1131_v29  ;;  %v485_v46 = vrot.slane %v409_v37, %v1121_v19  ;;  %852 = vmatprep.subr.mxu1 %v942_v34  ;;  %v478_v60 = vcombine.high %v409_v37, %v942_v34 }
 0x397   :  { %v407_v42 = vpop.permute.xlu1 %406  ;;  %853 = vmatpush3.msra.mxu1 %v639_v45 }
 0x398   :  { %v411_v44 = vmul.f32 %v407_v42, %v1073_v31  ;;  %549 = vrot.lane.b32.xlu1 %v457_v38, %s946_s16  ;;  %v474_v27 = vcombine.high %v1146_v39, %v942_v34  ;;  %v441_v31 = vrot.slane %v427_v41, %v1121_v19  ;;  %v475_v52 = vcombine.high %v457_v38, %v942_v34  ;;  %s955_s16 = smov 48  }
 0x399   :  { %854 = vmatprep.subr.mxu1 %v942_v34  ;;  %v492_v3 = vrot.slane %v478_v60, %v1121_v19 }
 0x39a   :  { %v500_v47 = vrot.slane %v411_v44, %v1121_v19  ;;  %545 = vrot.lane.b32.xlu0 %v474_v27, %s947_s0  ;;  %855 = vmatpush3.msra.mxu1 %v638_v48  ;;  %v493_v55 = vcombine.high %v411_v44, %v942_v34  ;;  %v458_v58 = vcombine.low %v426_v49, %v441_v31  ;;  %s959_s0 = smov 112  }
 0x39b   :  { %856 = vmatprep.subr.mxu1 %v942_v34  ;;  %v459_v62 = vcombine.high %v426_v49, %v441_v31 }
 0x39c   :  { %v508_v50 = vcombine.low %v485_v46, %v500_v47  ;;  %v509_v51 = vcombine.high %v485_v46, %v500_v47  ;;  %857 = vmatpush3.msra.mxu1 %v637_v54  ;;  %v507_v63 = vrot.slane %v493_v55, %v1121_v19  ;;  %v466_v1 = vrot.slane %v458_v58, %v1131_v29 }
 0x39d   :  { %858 = vmatprep.subr.mxu1 %v942_v34  ;;  %v473_v6 = vrot.slane %v459_v62, %v1131_v29 }
 0x39e   :  { %553 = vrot.lane.b32.xlu0 %v475_v52, %s948_s19  ;;  %v516_v53 = vrot.slane %v508_v50, %v1131_v29  ;;  %v523_v57 = vrot.slane %v509_v51, %v1131_v29  ;;  %859 = vmatpush3.msra.mxu1 %v636_v59  ;;  %v476_v5 = vcombine.high %v466_v1, %v942_v34  ;;  %s746_s19 = sshll.u32 %s961_s18, 4  ;;  %s747_s19 = int_to_ptr.vmem [resolvable:$true] %s746_s19 }
 0x39f   :  { %860 = vmatprep.subr.mxu1 %v942_v34  ;;  %v524_v7 = vcombine.low %v492_v3, %v507_v63  ;;  %v477_v10 = vcombine.high %v473_v6, %v942_v34  ;;  %v525_v12 = vcombine.high %v492_v3, %v507_v63  ;;  %s898_s3 = scalar_lea.vmem %s747_s19, 32  ;;  %p903_p1 = scmp.lt.s32.totalorder %s747_s19, %s747_s19 }
 0x3a0   :  { %573 = vrot.lane.b32.xlu1 %v516_v53, %s949_s21  ;;  %v540_v56 = vcombine.high %v516_v53, %v942_v34  ;;  %v541_v0 = vcombine.high %v523_v57, %v942_v34  ;;  %861 = vmatpush3.msra.mxu1 %v635_v61  ;;  %p899_p0 = scmp.ne.s32.totalorder %s747_s19, %s898_s3  ;;  %p904_p2 = scmp.lt.s32.totalorder %s898_s3, %s898_s3 }
 0x3a1   :  { %862 = vmatprep.subr.mxu1 %v942_v34  ;;  %v532_v11 = vrot.slane %v524_v7, %v1131_v29  ;;  %v539_v14 = vrot.slane %v525_v12, %v1131_v29 }
 0x3a2   :  { %577 = vrot.lane.b32.xlu0 %v540_v56, %s950_s24  ;;  %863 = vmatpush3.msra.mxu1 %v634_v2  ;;  %p905_p3 = por %p904_p2, %p903_p1 }
 0x3a3   :  { %864 = vmatprep.subr.mxu1 %v942_v34  ;;  %v542_v13 = vcombine.high %v532_v11, %v942_v34  ;;  %v543_v15 = vcombine.high %v539_v14, %v942_v34 }
 0x3a4   :  { %581 = vrot.lane.b32.xlu1 %v523_v57, %s951_s6  ;;  %865 = vmatpush3.msra.mxu1 %v633_v4  ;;  %p906_p4 = pnand %p905_p3, %p899_p0 }
 0x3a5   :  { %866 = vmatprep.subr.mxu1 %v942_v34 }
 0x3a6   :  { %585 = vrot.lane.b32.xlu0 %v541_v0, %s952_s27  ;;  %867 = vmatpush3.msra.mxu1 %v632_v8 }
 0x3a7   :  { %868 = vmatprep.subr.mxu1 %v942_v34 }
 0x3a8   :  { %557 = vrot.lane.b32.xlu1 %v466_v1, %s953_s30  ;;  %869 = vmatpush3.msra.mxu1 %v631_v9 }
 0x3aa   :  { %561 = vrot.lane.b32.xlu0 %v476_v5, %s954_s13 }
 0x3ac   :  { %565 = vrot.lane.b32.xlu1 %v473_v6, %s955_s16 }
 0x3ae   :  { %569 = vrot.lane.b32.xlu0 %v477_v10, %s956_s1 }
 0x3b0   :  { %589 = vrot.lane.b32.xlu1 %v532_v11, %s957_s17 }
 0x3b2   :  { %593 = vrot.lane.b32.xlu0 %v542_v13, %s958_s7 }
 0x3b4   :  { %597 = vrot.lane.b32.xlu1 %v539_v14, %s959_s0 }
 0x3b6   :  { %601 = vrot.lane.b32.xlu0 %v543_v15, %s960_s2 }
 0x40a   :  { %v550_v17 = vpop.permute.xlu1 %549 }
 0x40c   :  { %v546_v16 = vpop.permute.xlu0 %545 }
 0x40d   :  { %v604_v21 = vsel %vm165_vm3, %v1146_v39, %v546_v16  ;;  %vm619_vm3 = vcmask 654336  }
 0x40e   :  { %v605_v25 = vsel %vm220_vm9, %v604_v21, %v550_v17  ;;  %vm629_vm9 = vcmask 982016  }
 0x410   :  { %v554_v18 = vpop.permute.xlu0 %553 }
 0x411   :  { %v607_v26 = vsel %vm606_vm13, %v605_v25, %v554_v18 }
 0x412   :  { %v574_v19 = vpop.permute.xlu1 %573 }
 0x414   :  { %v578_v20 = vpop.permute.xlu0 %577 }
 0x416   :  { %v582_v22 = vpop.permute.xlu1 %581 }
 0x418   :  { %v586_v24 = vpop.permute.xlu0 %585 }
 0x41a   :  { %v558_v29 = vpop.permute.xlu1 %557 }
 0x41b   :  { %v609_v34 = vsel %vm608_vm14, %v607_v26, %v558_v29 }
 0x41c   :  { %v562_v30 = vpop.permute.xlu0 %561 }
 0x41d   :  { %v611_v32 = vsel %vm610_vm15, %v609_v34, %v562_v30 }
 0x41e   :  { %v566_v28 = vpop.permute.xlu1 %565 }
 0x41f   :  { %v613_v23 = vsel %vm612_vm1, %v611_v32, %v566_v28 }
 0x420   :  { %v570_v33 = vpop.permute.xlu0 %569 }
 0x421   :  { %v615_v35 = vsel %vm614_vm2, %v613_v23, %v570_v33 }
 0x422   :  { %v616_v36 = vsel %vm55_vm0, %v615_v35, %v574_v19  ;;  %v590_v37 = vpop.permute.xlu1 %589 }
 0x423   :  { %v618_v38 = vsel %vm617_vm4, %v616_v36, %v578_v20 }
 0x424   :  { %v620_v39 = vsel %vm619_vm3, %v618_v38, %v582_v22  ;;  %v594_v40 = vpop.permute.xlu0 %593 }
 0x425   :  { %v622_v41 = vsel %vm621_vm5, %v620_v39, %v586_v24 }
 0x426   :  { %v624_v42 = vsel %vm623_vm6, %v622_v41, %v590_v37  ;;  %v598_v43 = vpop.permute.xlu1 %597 }
 0x427   :  { %v626_v44 = vsel %vm625_vm7, %v624_v42, %v594_v40 }
 0x428   :  { %v628_v27 = vsel %vm627_vm8, %v626_v44, %v598_v43  ;;  %v602_v45 = vpop.permute.xlu0 %601 }
 0x429   :  { %v630_v46 = vsel %vm629_vm9, %v628_v27, %v602_v45 }
 0x42a   :  { %871 = vmatmul.mubr.f32.vlgmr.msra.gmra.mxu1 %v630_v46 }
 0x42b   :  { %909 = shalt.err (!%p906_p4)
}
 0x42c   :  { %749 = dma.vmem_to_hbm [thread:$0]  %s747_s19, 32, %s1238_s10, [#allocation5]   ;;  %v769_v47 = vld [vmem:[%s1236_s8] ss:$0 sm:$0xff] }
 0x42d   :  { %s962_s24 = smov [#allocation2]  }
 0x42e   :  { %s736_s4 = sshll.u32 %s962_s24, 4  ;;  %s737_s4 = int_to_ptr.vmem [resolvable:$true] %s736_s4 }
 0x42f   :  { %s918_s5 = scalar_lea.vmem %s737_s4, 32  ;;  %p923_p6 = scmp.lt.s32.totalorder %s737_s4, %s737_s4 }
 0x430   :  { %p919_p5 = scmp.ne.s32.totalorder %s737_s4, %s918_s5  ;;  %p924_p7 = scmp.lt.s32.totalorder %s918_s5, %s918_s5 }
 0x432   :  { %p925_p8 = por %p924_p7, %p923_p6 }
 0x434   :  { %p926_p9 = pnand %p925_p8, %p919_p5 }
 0x4ea   :  { %v720_v31 = vpop.f32.mrf.mxu1 }
 0x4eb   :  { %v721_v48 = vadd.f32 %v769_v47, %v720_v31 }
 0x4ec   :  { %v872_v49 = vpop.f32.mrf.mxu1 }
 0x4ed   :  { %v725_v50 = vmul.f32 0.01, %v721_v48  ;;  %vm724_vm0 = vcmp.ge.f32.partialorder %v721_v48, 0.0 }
 0x4ef   :  { %v726_v51 = vsel %vm724_vm0, %v721_v48, %v725_v50 }
 0x4f0   :  { %728 = vst.msk [vmem:[#allocation2] sm:$0x3] %vm727_vm12, %v726_v51 }
 0x4f1   :  { %929 = shalt.err (!%p926_p9)
}
 0x4f2   :  { %739 = dma.vmem_to_hbm [thread:$0]  %s737_s4, 32, %s1237_s9, [#allocation3]  }
 0x4f3   :  { %938 = dma.done.wait [#allocation3], 32  }
 0x4f4   :  { %939 = vsyncadd [#allocation3], 4294967264 }
 0x4f5   :  { %940 = dma.done.wait [#allocation5], 32  }
 0x4f6   :  { %941 = vsyncadd [#allocation5], 4294967264 }
 0x4f7   :  { %756 = vsyncpa [#allocation3], 1 }
 0x4f8   :  { %757 = vsyncpa [#allocation5], 1 }

</bundles_post_ra>
